<compile_context>
chip_gen: v7x
topology: tpu7x:2x2x1
jax: 0.10.0
libtpu: 0.0.40
codegen_flags: <defaults>
</compile_context>

<pallas_src>
import jax
import jax.numpy as jnp
from jax import lax
from jax.experimental import pallas as pl
from jax.experimental.pallas import tpu as pltpu

BN_EPS = 1e-5
HIDDEN = 64  # fixed by the module definition (Conv2d(in_channels, 64, ...))


def _pick_tile(S):
    """Largest lane-aligned (multiple-of-128) spatial tile that divides S, capped
    at 2048; falls back to full S when S is not a multiple of 128."""
    if S % 128 != 0:
        return S
    best = 128
    t = 128
    cap = min(S, 2048)
    while t <= cap:
        if S % t == 0:
            best = t
        t += 128
    return best


# ----------------------------- pass 1: BN statistics -----------------------------
def _stats_kernel(x_ref, gram_ref, sumx_ref):
    # x_ref:    (1, C_in, TS)   lane-dense tile of sample n
    # gram_ref: (1, C_in, C_in) per-sample accumulator of x x^T
    # sumx_ref: (1, C_in, 1)    per-sample accumulator of row sums
    s = pl.program_id(1)
    x = x_ref[0]                                                    # (C_in, TS)

    g = jnp.einsum("ct,dt->cd", x, x,
                   preferred_element_type=jnp.float32)              # (C_in, C_in)
    sx = jnp.sum(x, axis=1, keepdims=True)                          # (C_in, 1)

    @pl.when(s == 0)
    def _():
        gram_ref[...] = jnp.zeros_like(gram_ref)
        sumx_ref[...] = jnp.zeros_like(sumx_ref)

    gram_ref[...] += g[None]
    sumx_ref[...] += sx[None]


# ------------------- pass 2: matmul -> BN affine -> ReLU -> reduce ---------------
def _fwd_kernel(x_ref, w1t_ref, scale_ref, shift_ref, w2bar_ref, o_ref, acc_ref):
    # x_ref:     (1, C_in, TS)
    # w1t_ref:   (HIDDEN, C_in)
    # scale_ref: (HIDDEN, 1)   gamma / sqrt(var + eps)
    # shift_ref: (HIDDEN, 1)   beta - mu * scale
    # w2bar_ref: (1, HIDDEN)   mean_c(w2) / S   (conv2 + mean folded, 1/S included)
    # o_ref:     (1, 1, 128)   lane-dense per-sample output block
    # acc_ref:   (1, TS)       per-sample partial-sum scratch
    s = pl.program_id(1)
    x = x_ref[0]                                                    # (C_in, TS)

    h = jnp.dot(w1t_ref[...], x, preferred_element_type=jnp.float32)   # (H, TS)
    h = h * scale_ref[...] + shift_ref[...]                         # BN affine
    h = jnp.maximum(h, 0.0)                                         # ReLU
    part = jnp.dot(w2bar_ref[...], h,
                   preferred_element_type=jnp.float32)              # (1, TS)

    @pl.when(s == 0)
    def _():
        acc_ref[...] = jnp.zeros_like(acc_ref)

    acc_ref[...] += part

    @pl.when(s == pl.num_programs(1) - 1)
    def _():
        tot = jnp.sum(acc_ref[...], axis=1, keepdims=True)          # (1, 1)
        o_ref[...] = jnp.broadcast_to(tot[None, :, :], o_ref.shape)


# ------------------------------------ wrapper -------------------------------------
def _naive_discriminator_impl(x_nchw, params):
    """x_nchw: (N, C_in, H, W) float32.  Returns (N,) float32."""
    w1, gamma, beta, w2, b2 = params
    N, C_in, H, W = x_nchw.shape
    S = H * W
    NS = N * S

    x = x_nchw.reshape(N, C_in, S)          # NCHW -> (N, C, H*W): free, no transpose
    TS = _pick_tile(S)
    num_s = S // TS

    per_step_bytes = 4 * TS * (C_in + HIDDEN + 2)
    vmem_limit = int(min(32 * 1024 * 1024,
                         max(16 * 1024 * 1024, 8 * per_step_bytes)))
    cparams = pltpu.CompilerParams(
        dimension_semantics=("parallel", "arbitrary"),
        vmem_limit_bytes=vmem_limit)

    x_bytes = 4 * N * S * C_in

    # ---- pass 1: per-sample partial gram / column sums ----
    gram_p, sumx_p = pl.pallas_call(
        _stats_kernel,
        out_shape=(jax.ShapeDtypeStruct((N, C_in, C_in), jnp.float32),
                   jax.ShapeDtypeStruct((N, C_in, 1), jnp.float32)),
        grid=(N, num_s),
        in_specs=[pl.BlockSpec((1, C_in, TS), lambda n, s: (n, 0, s))],
        out_specs=(pl.BlockSpec((1, C_in, C_in), lambda n, s: (n, 0, 0)),
                   pl.BlockSpec((1, C_in, 1), lambda n, s: (n, 0, 0))),
        compiler_params=cparams,
        cost_estimate=pl.CostEstimate(
            flops=2 * NS * C_in * C_in + NS * C_in,
            transcendentals=0,
            bytes_accessed=x_bytes + 4 * N * (C_in * C_in + C_in)),
    )(x)

    # ---- tiny exact BN-stat algebra (O(C_in * HIDDEN) flops, plain XLA) ----
    gram = jnp.sum(gram_p, axis=0)                       # (C_in, C_in)
    mean_x = jnp.sum(sumx_p, axis=0)[:, 0] / NS          # (C_in,)
    mu_h = mean_x @ w1                                   # (HIDDEN,)
    e_h2 = jnp.sum(w1 * (gram @ w1), axis=0) / NS        # diag(w1^T G w1) / NS
    var = jnp.maximum(e_h2 - mu_h * mu_h, 0.0)           # biased var (train-mode BN)
    inv_std = lax.rsqrt(var + BN_EPS)
    scale_v = gamma * inv_std
    shift_v = beta - mu_h * scale_v

    # exact fold of conv2(+bias) and the mean over (C_out, S)
    w2_bar = (jnp.mean(w2, axis=1) / S).reshape(1, HIDDEN)
    b2_bar = jnp.mean(b2)

    # ---- pass 2: tiled matmul -> normalize -> ReLU -> per-sample reduction ----
    raw = pl.pallas_call(
        _fwd_kernel,
        out_shape=jax.ShapeDtypeStruct((N, 1, 128), jnp.float32),
        grid=(N, num_s),
        in_specs=[pl.BlockSpec((1, C_in, TS), lambda n, s: (n, 0, s)),
                  pl.BlockSpec((HIDDEN, C_in), lambda n, s: (0, 0)),
                  pl.BlockSpec((HIDDEN, 1), lambda n, s: (0, 0)),
                  pl.BlockSpec((HIDDEN, 1), lambda n, s: (0, 0)),
                  pl.BlockSpec((1, HIDDEN), lambda n, s: (0, 0))],
        out_specs=pl.BlockSpec((1, 1, 128), lambda n, s: (n, 0, 0)),
        scratch_shapes=[pltpu.VMEM((1, TS), jnp.float32)],
        compiler_params=cparams,
        cost_estimate=pl.CostEstimate(
            flops=2 * NS * C_in * HIDDEN + 5 * NS * HIDDEN,
            transcendentals=0,
            bytes_accessed=x_bytes + 4 * (HIDDEN * (C_in + 3) + N * 128)),
    )(x, w1.T, scale_v.reshape(HIDDEN, 1), shift_v.reshape(HIDDEN, 1), w2_bar)

    return raw[:, 0, 0] + b2_bar


naive_discriminator = jax.jit(_naive_discriminator_impl)

# TODO(synk): BatchNorm running_mean/var buffer updates (a training-time side
# effect, not part of the returned tensor) are not reproduced.


def init_params(key, in_channels, out_channels):
    k1, k2, k3, k4, k5 = jax.random.split(key, 5)
    w1 = jax.random.normal(k1, (in_channels, HIDDEN), jnp.float32) * 0.1
    gamma = 1.0 + 0.1 * jax.random.normal(k4, (HIDDEN,), jnp.float32)
    beta = 0.1 * jax.random.normal(k5, (HIDDEN,), jnp.float32)
    w2 = jax.random.normal(k2, (HIDDEN, out_channels), jnp.float32) * 0.1
    b2 = jax.random.normal(k3, (out_channels,), jnp.float32) * 0.1
    return (w1, gamma, beta, w2, b2)


def reference(x_nchw, params):
    """Pure-JAX reference mirroring the PyTorch forward (training-mode BN)."""
    w1, gamma, beta, w2, b2 = params
    N, C_in, H, W = x_nchw.shape
    x = jnp.transpose(x_nchw, (0, 2, 3, 1)).reshape(N, H * W, C_in)
    h = jnp.einsum("nsc,cd->nsd", x, w1)
    mu = jnp.mean(h, axis=(0, 1), keepdims=True)
    var = jnp.mean((h - mu) ** 2, axis=(0, 1), keepdims=True)
    h = (h - mu) / jnp.sqrt(var + BN_EPS) * gamma + beta
    h = jnp.maximum(h, 0.0)
    y = jnp.einsum("nsd,de->nse", h, w2) + b2
    return jnp.mean(y, axis=(1, 2))


if __name__ == "__main__":
    N, C_in, H, W = 2, 4, 16, 16
    C_out = 8

    key = jax.random.PRNGKey(0)
    kx, kp = jax.random.split(key)
    x = jax.random.normal(kx, (N, C_in, H, W), jnp.float32)
    params = init_params(kp, C_in, C_out)

    out = jax.block_until_ready(naive_discriminator(x, params))
    ref = reference(x, params)

    assert out.shape == (N,)
    assert jnp.allclose(out, ref, atol=1e-4, rtol=1e-4), (out, ref)
    print("KERNEL_OK")
</pallas_src>

<mosaic_0001>
module attributes {stable_mosaic.version = 11 : i64} {
  func.func @_stats_kernel(%arg0: i32, %arg1: i32, %arg2: memref<1x4x256xf32, #tpu.memory_space<vmem>>, %arg3: memref<1x4x4xf32, #tpu.memory_space<vmem>>, %arg4: memref<1x4x1xf32, #tpu.memory_space<vmem>>) attributes {dimension_semantics = [#tpu.dimension_semantics<parallel>, #tpu.dimension_semantics<arbitrary>], iteration_bounds = array<i64: 2, 1>, scalar_prefetch = 0 : i64, scratch_operands = 0 : i64, tpu.core_type = #tpu.core_type<tc>, window_params = [{transform_indices = @transform_0, window_bounds = array<i64: 1, 4, 256>}, {transform_indices = @transform_1, window_bounds = array<i64: 1, 4, 4>}, {transform_indices = @transform_2, window_bounds = array<i64: 1, 4, 1>}]} {
    %c0 = arith.constant 0 : index
    %c0_0 = arith.constant 0 : index
    %c0_1 = arith.constant 0 : index
    %0 = vector.load %arg2[%c0, %c0_0, %c0_1] : memref<1x4x256xf32, #tpu.memory_space<vmem>>, vector<1x4x256xf32>
    %1 = vector.shape_cast %0 : vector<1x4x256xf32> to vector<4x256xf32>
    "tpu.trace_start"() <{level = 10 : i32, message = "ct,dt->cd"}> : () -> ()
    %cst = arith.constant dense<0.000000e+00> : vector<4x4xf32>
    %2 = tpu.matmul %1, %1, %cst {dimension_numbers = #tpu.dot_dimension_numbers<[1], [1], [0], [0], [0, 0, 1, 0], [], []>} : vector<4x256xf32>, vector<4x256xf32>, vector<4x4xf32> -> vector<4x4xf32>
    "tpu.trace_stop"() : () -> ()
    %cst_2 = arith.constant dense<0.000000e+00> : vector<4xf32>
    %3 = vector.multi_reduction <add>, %1, %cst_2 [1] : vector<4x256xf32> to vector<4xf32>
    %4 = vector.shape_cast %3 : vector<4xf32> to vector<4x1xf32>
    %c0_i32 = arith.constant 0 : i32
    %5 = arith.cmpi eq, %arg1, %c0_i32 : i32
    %6 = arith.extui %5 : i1 to i32
    %c0_i32_3 = arith.constant 0 : i32
    %7 = arith.cmpi ne, %6, %c0_i32_3 : i32
    scf.if %7 {
      %cst_16 = arith.constant 0.000000e+00 : f32
      %16 = vector.broadcast %cst_16 : f32 to vector<1x4x4xf32>
      %c0_17 = arith.constant 0 : index
      %c0_18 = arith.constant 0 : index
      %c0_19 = arith.constant 0 : index
      %17 = vector.load %arg3[%c0_17, %c0_18, %c0_19] : memref<1x4x4xf32, #tpu.memory_space<vmem>>, vector<1x4x4xf32>
      tpu.vector_store %arg3[%c0_17, %c0_18, %c0_19], %16 {strides = array<i32>} : memref<1x4x4xf32, #tpu.memory_space<vmem>>, vector<1x4x4xf32>,
      %cst_20 = arith.constant 0.000000e+00 : f32
      %18 = vector.broadcast %cst_20 : f32 to vector<1x4x1xf32>
      %c0_21 = arith.constant 0 : index
      %c0_22 = arith.constant 0 : index
      %c0_23 = arith.constant 0 : index
      %19 = vector.load %arg4[%c0_21, %c0_22, %c0_23] : memref<1x4x1xf32, #tpu.memory_space<vmem>>, vector<1x4x1xf32>
      tpu.vector_store %arg4[%c0_21, %c0_22, %c0_23], %18 {strides = array<i32>} : memref<1x4x1xf32, #tpu.memory_space<vmem>>, vector<1x4x1xf32>,
    } else {
    }
    %c0_4 = arith.constant 0 : index
    %c0_5 = arith.constant 0 : index
    %c0_6 = arith.constant 0 : index
    %8 = vector.load %arg3[%c0_4, %c0_5, %c0_6] : memref<1x4x4xf32, #tpu.memory_space<vmem>>, vector<1x4x4xf32>
    %9 = vector.shape_cast %2 : vector<4x4xf32> to vector<1x4x4xf32>
    %10 = arith.addf %8, %9 : vector<1x4x4xf32>
    %c0_7 = arith.constant 0 : index
    %c0_8 = arith.constant 0 : index
    %c0_9 = arith.constant 0 : index
    %11 = vector.load %arg3[%c0_7, %c0_8, %c0_9] : memref<1x4x4xf32, #tpu.memory_space<vmem>>, vector<1x4x4xf32>
    tpu.vector_store %arg3[%c0_7, %c0_8, %c0_9], %10 {strides = array<i32>} : memref<1x4x4xf32, #tpu.memory_space<vmem>>, vector<1x4x4xf32>,
    %c0_10 = arith.constant 0 : index
    %c0_11 = arith.constant 0 : index
    %c0_12 = arith.constant 0 : index
    %12 = vector.load %arg4[%c0_10, %c0_11, %c0_12] : memref<1x4x1xf32, #tpu.memory_space<vmem>>, vector<1x4x1xf32>
    %13 = vector.shape_cast %4 : vector<4x1xf32> to vector<1x4x1xf32>
    %14 = arith.addf %12, %13 : vector<1x4x1xf32>
    %c0_13 = arith.constant 0 : index
    %c0_14 = arith.constant 0 : index
    %c0_15 = arith.constant 0 : index
    %15 = vector.load %arg4[%c0_13, %c0_14, %c0_15] : memref<1x4x1xf32, #tpu.memory_space<vmem>>, vector<1x4x1xf32>
    tpu.vector_store %arg4[%c0_13, %c0_14, %c0_15], %14 {strides = array<i32>} : memref<1x4x1xf32, #tpu.memory_space<vmem>>, vector<1x4x1xf32>,
    return
  }
  func.func @transform_0(%arg0: i32, %arg1: i32) -> (i32, i32, i32) {
    %c0_i32 = arith.constant 0 : i32
    %c0_i32_0 = arith.constant 0 : i32
    return %arg0, %c0_i32, %arg1 : i32, i32, i32
  }
  func.func @transform_1(%arg0: i32, %arg1: i32) -> (i32, i32, i32) {
    %c0_i32 = arith.constant 0 : i32
    %c0_i32_0 = arith.constant 0 : i32
    %c0_i32_1 = arith.constant 0 : i32
    return %arg0, %c0_i32, %c0_i32_0 : i32, i32, i32
  }
  func.func @transform_2(%arg0: i32, %arg1: i32) -> (i32, i32, i32) {
    %c0_i32 = arith.constant 0 : i32
    %c0_i32_0 = arith.constant 0 : i32
    %c0_i32_1 = arith.constant 0 : i32
    return %arg0, %c0_i32, %c0_i32_0 : i32, i32, i32
  }
}

module attributes {stable_mosaic.version = 11 : i64} {
  func.func @_fwd_kernel(%arg0: i32, %arg1: i32, %arg2: memref<1x4x256xf32, #tpu.memory_space<vmem>>, %arg3: memref<64x4xf32, #tpu.memory_space<vmem>>, %arg4: memref<64x1xf32, #tpu.memory_space<vmem>>, %arg5: memref<64x1xf32, #tpu.memory_space<vmem>>, %arg6: memref<1x64xf32, #tpu.memory_space<vmem>>, %arg7: memref<1x1x128xf32, #tpu.memory_space<vmem>>, %arg8: memref<1x256xf32, #tpu.memory_space<vmem>>) attributes {dimension_semantics = [#tpu.dimension_semantics<parallel>, #tpu.dimension_semantics<arbitrary>], iteration_bounds = array<i64: 2, 1>, scalar_prefetch = 0 : i64, scratch_operands = 1 : i64, tpu.core_type = #tpu.core_type<tc>, window_params = [{transform_indices = @transform_0, window_bounds = array<i64: 1, 4, 256>}, {pipeline_mode = #tpu.pipeline_mode<synchronous>, transform_indices = @transform_1, window_bounds = array<i64: 64, 4>}, {pipeline_mode = #tpu.pipeline_mode<synchronous>, transform_indices = @transform_2, window_bounds = array<i64: 64, 1>}, {pipeline_mode = #tpu.pipeline_mode<synchronous>, transform_indices = @transform_3, window_bounds = array<i64: 64, 1>}, {pipeline_mode = #tpu.pipeline_mode<synchronous>, transform_indices = @transform_4, window_bounds = array<i64: 1, 64>}, {transform_indices = @transform_5, window_bounds = array<i64: 1, 1, 128>}]} {
    %c0 = arith.constant 0 : index
    %c0_0 = arith.constant 0 : index
    %c0_1 = arith.constant 0 : index
    %0 = vector.load %arg2[%c0, %c0_0, %c0_1] : memref<1x4x256xf32, #tpu.memory_space<vmem>>, vector<1x4x256xf32>
    %1 = vector.shape_cast %0 : vector<1x4x256xf32> to vector<4x256xf32>
    %c0_2 = arith.constant 0 : index
    %c0_3 = arith.constant 0 : index
    %2 = vector.load %arg3[%c0_2, %c0_3] : memref<64x4xf32, #tpu.memory_space<vmem>>, vector<64x4xf32>
    %cst = arith.constant dense<0.000000e+00> : vector<64x256xf32>
    %3 = tpu.matmul %2, %1, %cst {dimension_numbers = #tpu.dot_dimension_numbers<[1], [0], [0], [1], [0, 0, 1, 1], [], []>} : vector<64x4xf32>, vector<4x256xf32>, vector<64x256xf32> -> vector<64x256xf32>
    %c0_4 = arith.constant 0 : index
    %c0_5 = arith.constant 0 : index
    %4 = vector.load %arg4[%c0_4, %c0_5] : memref<64x1xf32, #tpu.memory_space<vmem>>, vector<64x1xf32>
    %5 = vector.broadcast %4 : vector<64x1xf32> to vector<64x256xf32>
    %6 = arith.mulf %3, %5 : vector<64x256xf32>
    %c0_6 = arith.constant 0 : index
    %c0_7 = arith.constant 0 : index
    %7 = vector.load %arg5[%c0_6, %c0_7] : memref<64x1xf32, #tpu.memory_space<vmem>>, vector<64x1xf32>
    %8 = vector.broadcast %7 : vector<64x1xf32> to vector<64x256xf32>
    %9 = arith.addf %6, %8 : vector<64x256xf32>
    %cst_8 = arith.constant 0.000000e+00 : f32
    %10 = vector.broadcast %cst_8 : f32 to vector<64x256xf32>
    %11 = arith.maximumf %9, %10 : vector<64x256xf32>
    %c0_9 = arith.constant 0 : index
    %c0_10 = arith.constant 0 : index
    %12 = vector.load %arg6[%c0_9, %c0_10] : memref<1x64xf32, #tpu.memory_space<vmem>>, vector<1x64xf32>
    %cst_11 = arith.constant dense<0.000000e+00> : vector<1x256xf32>
    %13 = tpu.matmul %12, %11, %cst_11 {dimension_numbers = #tpu.dot_dimension_numbers<[1], [0], [0], [1], [0, 0, 1, 1], [], []>} : vector<1x64xf32>, vector<64x256xf32>, vector<1x256xf32> -> vector<1x256xf32>
    %c0_i32 = arith.constant 0 : i32
    %14 = arith.cmpi eq, %arg1, %c0_i32 : i32
    %15 = arith.extui %14 : i1 to i32
    %c0_i32_12 = arith.constant 0 : i32
    %16 = arith.cmpi ne, %15, %c0_i32_12 : i32
    scf.if %16 {
      %cst_19 = arith.constant 0.000000e+00 : f32
      %23 = vector.broadcast %cst_19 : f32 to vector<1x256xf32>
      %c0_20 = arith.constant 0 : index
      %c0_21 = arith.constant 0 : index
      %24 = vector.load %arg8[%c0_20, %c0_21] : memref<1x256xf32, #tpu.memory_space<vmem>>, vector<1x256xf32>
      tpu.vector_store %arg8[%c0_20, %c0_21], %23 {strides = array<i32>} : memref<1x256xf32, #tpu.memory_space<vmem>>, vector<1x256xf32>,
    } else {
    }
    %c0_13 = arith.constant 0 : index
    %c0_14 = arith.constant 0 : index
    %17 = vector.load %arg8[%c0_13, %c0_14] : memref<1x256xf32, #tpu.memory_space<vmem>>, vector<1x256xf32>
    %18 = arith.addf %17, %13 : vector<1x256xf32>
    %c0_15 = arith.constant 0 : index
    %c0_16 = arith.constant 0 : index
    %19 = vector.load %arg8[%c0_15, %c0_16] : memref<1x256xf32, #tpu.memory_space<vmem>>, vector<1x256xf32>
    tpu.vector_store %arg8[%c0_15, %c0_16], %18 {strides = array<i32>} : memref<1x256xf32, #tpu.memory_space<vmem>>, vector<1x256xf32>,
    %c0_i32_17 = arith.constant 0 : i32
    %20 = arith.cmpi eq, %arg1, %c0_i32_17 : i32
    %21 = arith.extui %20 : i1 to i32
    %c0_i32_18 = arith.constant 0 : i32
    %22 = arith.cmpi ne, %21, %c0_i32_18 : i32
    scf.if %22 {
      %c0_19 = arith.constant 0 : index
      %c0_20 = arith.constant 0 : index
      %23 = vector.load %arg8[%c0_19, %c0_20] : memref<1x256xf32, #tpu.memory_space<vmem>>, vector<1x256xf32>
      %cst_21 = arith.constant dense<0.000000e+00> : vector<1xf32>
      %24 = vector.multi_reduction <add>, %23, %cst_21 [1] : vector<1x256xf32> to vector<1xf32>
      %25 = vector.shape_cast %24 : vector<1xf32> to vector<1x1xf32>
      %26 = vector.shape_cast %25 : vector<1x1xf32> to vector<1x1x1xf32>
      %27 = vector.shape_cast %26 : vector<1x1x1xf32> to vector<1x1x1xf32>
      %28 = vector.broadcast %27 : vector<1x1x1xf32> to vector<1x1x128xf32>
      %c0_22 = arith.constant 0 : index
      %c0_23 = arith.constant 0 : index
      %c0_24 = arith.constant 0 : index
      %29 = vector.load %arg7[%c0_22, %c0_23, %c0_24] : memref<1x1x128xf32, #tpu.memory_space<vmem>>, vector<1x1x128xf32>
      tpu.vector_store %arg7[%c0_22, %c0_23, %c0_24], %28 {strides = array<i32>} : memref<1x1x128xf32, #tpu.memory_space<vmem>>, vector<1x1x128xf32>,
    } else {
    }
    return
  }
  func.func @transform_0(%arg0: i32, %arg1: i32) -> (i32, i32, i32) {
    %c0_i32 = arith.constant 0 : i32
    %c0_i32_0 = arith.constant 0 : i32
    return %arg0, %c0_i32, %arg1 : i32, i32, i32
  }
  func.func @transform_1(%arg0: i32, %arg1: i32) -> (i32, i32) {
    %c0_i32 = arith.constant 0 : i32
    %c0_i32_0 = arith.constant 0 : i32
    %c0_i32_1 = arith.constant 0 : i32
    return %c0_i32, %c0_i32_0 : i32, i32
  }
  func.func @transform_2(%arg0: i32, %arg1: i32) -> (i32, i32) {
    %c0_i32 = arith.constant 0 : i32
    %c0_i32_0 = arith.constant 0 : i32
    %c0_i32_1 = arith.constant 0 : i32
    return %c0_i32, %c0_i32_0 : i32, i32
  }
  func.func @transform_3(%arg0: i32, %arg1: i32) -> (i32, i32) {
    %c0_i32 = arith.constant 0 : i32
    %c0_i32_0 = arith.constant 0 : i32
    %c0_i32_1 = arith.constant 0 : i32
    return %c0_i32, %c0_i32_0 : i32, i32
  }
  func.func @transform_4(%arg0: i32, %arg1: i32) -> (i32, i32) {
    %c0_i32 = arith.constant 0 : i32
    %c0_i32_0 = arith.constant 0 : i32
    %c0_i32_1 = arith.constant 0 : i32
    return %c0_i32, %c0_i32_0 : i32, i32
  }
  func.func @transform_5(%arg0: i32, %arg1: i32) -> (i32, i32, i32) {
    %c0_i32 = arith.constant 0 : i32
    %c0_i32_0 = arith.constant 0 : i32
    %c0_i32_1 = arith.constant 0 : i32
    return %arg0, %c0_i32, %c0_i32_0 : i32, i32, i32
  }
}

</mosaic_0001>

<bundles_post_ra>
// kernel: _naive_discriminator_impl.2
= control target key start
LH: loop header
LB: loop body
LE: loop exit
PB: predicated region body
PF: predicated region fallthrough
CT: control target
= control target key end

     0   :  { %s453_s9 = smov 0   ;;  %s455_s10 = smov 0   ;;  %s489_s0 = inlined_call_operand.vmem [shape: f32[2,4,256], index: 0, kind: input, shape index: {}]   ;;  %s490_s1 = inlined_call_operand.vmem [shape: f32[2,4,4], index: 1, kind: output, shape index: {0}]   ;;  %s491_s2 = inlined_call_operand.vmem [shape: f32[2,4,1], index: 2, kind: output, shape index: {1}]  }
   0x1   :  { %s457_s11 = smov 0  }
   0x2 LB: > { %s25_s12 = sadd.s32 1, %s431_s10  ;;  %p379_p0 = scmp.ge.s32.totalorder %s435_s11, 1  ;;  %s435_s11 = sphi %s457_s11, %s13_s11   ;;  %s431_s10 = sphi %s455_s10, %s493_s10   ;;  %s427_s9 = sphi %s453_s9, %s492_s9  }
   0x3   : > { %p27_p1 = scmp.ge.s32.totalorder %s25_s12, 2  ;;  %p134_p2 = scmp.lt.s32.totalorder %s435_s11, 3 }
   0x5   : > { %s495_s12 = smov (%p27_p1, %s25_s12), 0  ;;  %p135_p3 = pnand %p379_p0, %p134_p2 }
   0x6   : > { %p164_p4 = scmp.lt.s32.totalorder (!%p135_p3), %s427_s9, 1  ;;  %vm255_vm0 = vcmask (!%p135_p3), 1043456   ;;  %vm265_vm1 = vcmask (!%p135_p3), 27648   ;;  %vm267_vm2 = vcmask (!%p135_p3), 3072   ;;  %v437_v5 = vmov (!%p135_p3), 0.0  }
   0x7   : > { %138 = sbr.rel (%p135_p3) target bundleno = 239 (0xef), region = 24 }
   0xe   : > { %s497_s9 = smov (!%p164_p4, %s427_s9), 1 }
   0xf   : > { %s386_s13 = sshll.u32 %s497_s9, 3  ;;  %s382_s17 = sshll.u32 %s497_s9, 2 }
  0x10   : > { %s171_s16 = scalar_lea.vmem %s489_s0, %s386_s13  ;;  %s176_s20 = scalar_lea.vmem %s490_s1, %s382_s17 }
  0x11   : > { %v181_v0 = vld [vmem:[%s171_s16] sm:$0xff]  ;;  %s180_s23 = scalar_lea.vmem %s491_s2, %s382_s17  ;;  %266 = vst.msk [vmem:[%s176_s20] sm:$0xf] %vm265_vm1, %v437_v5 }
  0x12   : > { %v183_v1 = vcombine.high %v181_v0, %v181_v0  ;;  %v256_v2 = vsel %vm255_vm0, %v181_v0, 0.0  ;;  %268 = vst.msk [vmem:[%s180_s23] sm:$0xf] %vm267_vm2, %v437_v5 }
  0x14   : > { %185 = vmatprep.subr.mxu0 %v183_v1  ;;  %249 = vmatprep.mubr.f32.mxu0 %v183_v1  ;;  %v257_v3 = vsel %vm255_vm0, %v183_v1, 0.0 }
  0x15   : > { %186 = vmatpush1.xpose.msra.mxu0 %v181_v0  ;;  %v258_v4 = vadd.f32 %v257_v3, %v256_v2 }
  0x17   : > { %259 = vadd.xlane.f32.xlu0 %v258_v4 }
  0x18   : > { %250 = vmatmul.mubr.f32.vlgmr.msra.gmra.mrb[0].mxu0 %v181_v0  ;;  %v269_v9 = vld [vmem:[%s176_s20] sm:$0xf] }
  0x19   : > { %v273_v6 = vld [vmem:[%s180_s23] sm:$0xf] }
  0xa4   : > { %v260_v7 = vpop.xlane.xlu0 %259 }
  0xa5   : > { %v274_v8 = vadd.f32 %v273_v6, %v260_v7 }
  0xa7   : > { %276 = vst.msk [vmem:[%s180_s23] sm:$0xf] %vm267_vm2, %v274_v8 }
  0xeb   : > { %v251_v10 = vpop.f32.mrb[0].mxu0 }
  0xec   : > { %v270_v11 = vadd.f32 %v269_v9, %v251_v10  ;;  %v253_v12 = vpop.f32.mrb[1].mxu0 }
  0xee   : > { %272 = vst.msk [vmem:[%s176_s20] sm:$0xf] %vm265_vm1, %v270_v11 }
  0xef PF: > { %s13_s11 = sadd.s32 1, %s435_s11   ;;  %s492_s9 = smov %s431_s10 }
  0xf0   : > { %p10_p5 = scmp.ge.s32.totalorder %s13_s11, 4   ;;  %s493_s10 = smov %s495_s12 }
  0xf2   :  { %12 = sbr.rel (!%p10_p5) target bundleno = 2 (0x2), region = 70 }

// kernel: _naive_discriminator_impl.3
= control target key start
LH: loop header
LB: loop body
LE: loop exit
PB: predicated region body
PF: predicated region fallthrough
CT: control target
= control target key end

     0   :  { %s864_s18 = smov 0   ;;  %s866_s19 = smov 0   ;;  %s994_s0 = inlined_call_operand.vmem [shape: f32[2,4,256], index: 0, kind: input, shape index: {}]   ;;  %s995_s1 = inlined_call_operand.vmem [shape: f32[64,4], index: 1, kind: input, shape index: {}]   ;;  %s996_s2 = inlined_call_operand.vmem [shape: f32[64,1], index: 2, kind: input, shape index: {}]   ;;  %s997_s3 = inlined_call_operand.vmem [shape: f32[64,1], index: 3, kind: input, shape index: {}]   ;;  %s998_s4 = inlined_call_operand.vmem [shape: f32[1,64], index: 4, kind: input, shape index: {}]   ;;  %s999_s5 = inlined_call_operand.vmem [shape: f32[2,1,128], index: 5, kind: output, shape index: {}]  }
   0x1   :  { %s868_s20 = smov 0  }
   0x2 LB: > { %s27_s21 = sadd.s32 1, %s825_s19  ;;  %p744_p0 = scmp.ge.s32.totalorder %s829_s20, 1  ;;  %s829_s20 = sphi %s868_s20, %s15_s20   ;;  %s825_s19 = sphi %s866_s19, %s1001_s19   ;;  %s821_s18 = sphi %s864_s18, %s1000_s18  }
   0x3   : > { %p29_p1 = scmp.ge.s32.totalorder %s27_s21, 2  ;;  %p206_p2 = scmp.lt.s32.totalorder %s829_s20, 3 }
   0x5   : > { %s1003_s21 = smov (%p29_p1, %s27_s21), 0  ;;  %p207_p3 = pnand %p744_p0, %p206_p2 }
   0x6   : > { %p237_p4 = scmp.lt.s32.totalorder (!%p207_p3), %s821_s18, 1  ;;  %v831_v0 = vmov (!%p207_p3), 0.0   ;;  %v832_v1 = vmov (!%p207_p3), 0   ;;  %v467_v2 = vld [vmem:[%s997_s3] sm:$0xff] (!%p207_p3)  ;;  %v468_v4 = vld [vmem:[%s997_s3 + $0x8] sm:$0xff] (!%p207_p3)  ;;  %vm285_vm0 = vcmask (!%p207_p3), 1043456  }
   0x7   : > { %210 = sbr.rel (%p207_p3) target bundleno = 652 (0x28c), region = 40  ;;  %354 = vmatprep.mubr.f32.mxu0 (!%p207_p3), %v831_v0  ;;  %616 = vmatprep.mubr.f32.mxu1 (!%p207_p3), %v831_v0  ;;  %v403_v3 = vld [vmem:[%s996_s2] sm:$0xff] (!%p207_p3)  ;;  %v404_v5 = vld [vmem:[%s996_s2 + $0x8] sm:$0xff] (!%p207_p3)  ;;  %vm260_vm1 = vcmask (!%p207_p3), 31744   ;;  %v406_v9 = vld [vmem:[%s996_s2 + $0x18] sm:$0xff] (!%p207_p3)  ;;  %vm548_vm2 = vcmask (!%p207_p3), 523264  }
   0x8   : > { %805 = vset.pattern.permute.xlu1 (!%p207_p3), %v832_v1  ;;  %804 = vset.pattern.permute.xlu0 (!%p207_p3), %v832_v1  ;;  %v250_v8 = vld [vmem:[%s995_s1] sm:$0xff] (!%p207_p3)  ;;  %v405_v10 = vld [vmem:[%s996_s2 + $0x10] sm:$0xff] (!%p207_p3)  ;;  %v251_v11 = vld [vmem:[%s995_s1 + $0x8] sm:$0xff] (!%p207_p3)  ;;  %vm672_vm4 = vcmask (!%p207_p3), 1040384  }
   0x9   : > { %477 = vperm.xlu1 (!%p207_p3), %805, %v467_v2   ;;  %413 = vperm.xlu0 (!%p207_p3), %804, %v403_v3   ;;  %v470_v12 = vld [vmem:[%s997_s3 + $0x18] sm:$0xff] (!%p207_p3)  ;;  %v469_v13 = vld [vmem:[%s997_s3 + $0x10] sm:$0xff] (!%p207_p3)  ;;  %v408_v15 = vld [vmem:[%s996_s2 + $0x28] sm:$0xff] (!%p207_p3) }
   0xa   : > { %v252_v14 = vld [vmem:[%s995_s1 + $0x10] sm:$0xff] (!%p207_p3)  ;;  %v407_v16 = vld [vmem:[%s996_s2 + $0x20] sm:$0xff] (!%p207_p3)  ;;  %v253_v17 = vld [vmem:[%s995_s1 + $0x18] sm:$0xff] (!%p207_p3) }
   0xb   : > { %v472_v18 = vld [vmem:[%s997_s3 + $0x28] sm:$0xff] (!%p207_p3)  ;;  %v471_v19 = vld [vmem:[%s997_s3 + $0x20] sm:$0xff] (!%p207_p3)  ;;  %v410_v21 = vld [vmem:[%s996_s2 + $0x38] sm:$0xff] (!%p207_p3) }
   0xc   : > { %v254_v20 = vld [vmem:[%s995_s1 + $0x20] sm:$0xff] (!%p207_p3)  ;;  %v409_v22 = vld [vmem:[%s996_s2 + $0x30] sm:$0xff] (!%p207_p3)  ;;  %v255_v23 = vld [vmem:[%s995_s1 + $0x28] sm:$0xff] (!%p207_p3) }
   0xd   : > { %482 = vperm.xlu1 (!%p207_p3), %805, %v468_v4   ;;  %418 = vperm.xlu0 (!%p207_p3), %804, %v404_v5   ;;  %v474_v24 = vld [vmem:[%s997_s3 + $0x38] sm:$0xff] (!%p207_p3)  ;;  %v473_v25 = vld [vmem:[%s997_s3 + $0x30] sm:$0xff] (!%p207_p3) }
   0xe   : > { %s1005_s18 = smov (!%p237_p4, %s821_s18), 1  ;;  %v256_v26 = vld [vmem:[%s995_s1 + $0x30] sm:$0xff]  ;;  %v257_v27 = vld [vmem:[%s995_s1 + $0x38] sm:$0xff] }
   0xf   : > { %s760_s26 = sshll.u32 %s1005_s18, 3  ;;  %s248_s11 = scalar_lea.vmem %s999_s5, %s1005_s18 }
  0x10   : > { %s244_s29 = scalar_lea.vmem %s994_s0, %s760_s26 }
  0x11   : > { %v249_v6 = vld [vmem:[%s244_s29] sm:$0xff]  ;;  %428 = vperm.xlu1 %805, %v406_v9   ;;  %423 = vperm.xlu0 %804, %v405_v10  }
  0x12   : > { %v259_v7 = vcombine.high %v249_v6, %v249_v6 }
  0x14   : > { %747 = vmatprep.subr.msk.mxu0 %vm285_vm0, %v259_v7 }
  0x15   : > { %748 = vmatpush1.msk.msra.mxu0 %vm285_vm0, %v249_v6  ;;  %492 = vperm.xlu1 %805, %v470_v12  }
  0x16   : > { %749 = vmatmul.mubr.msk.f32.vlgmr.msra.gmra.mrb[0].mxu0 %vm260_vm1, %v250_v8  ;;  %487 = vperm.xlu0 %804, %v469_v13  }
  0x17   : > { %360 = vmatprep.mubr.f32.mxu0 %v831_v0 }
  0x19   : > { %438 = vperm.xlu1 %805, %v408_v15  }
  0x1a   : > { %750 = vmatmul.mubr.msk.f32.gmra.mrb[2].mxu0 %vm260_vm1, %v251_v11  ;;  %433 = vperm.xlu0 %804, %v407_v16  }
  0x1b   : > { %366 = vmatprep.mubr.f32.mxu0 %v831_v0 }
  0x1d   : > { %502 = vperm.xlu1 %805, %v472_v18  }
  0x1e   : > { %751 = vmatmul.mubr.msk.f32.gmra.mrb[4].mxu0 %vm260_vm1, %v252_v14  ;;  %497 = vperm.xlu0 %804, %v471_v19  }
  0x1f   : > { %372 = vmatprep.mubr.f32.mxu0 %v831_v0 }
  0x21   : > { %448 = vperm.xlu1 %805, %v410_v21  }
  0x22   : > { %752 = vmatmul.mubr.msk.f32.gmra.mrb[6].mxu0 %vm260_vm1, %v253_v17  ;;  %443 = vperm.xlu0 %804, %v409_v22  }
  0x23   : > { %378 = vmatprep.mubr.f32.mxu0 %v831_v0 }
  0x25   : > { %512 = vperm.xlu1 %805, %v474_v24  }
  0x26   : > { %753 = vmatmul.mubr.msk.f32.gmra.mrb[8].mxu0 %vm260_vm1, %v254_v20  ;;  %507 = vperm.xlu0 %804, %v473_v25  }
  0x27   : > { %384 = vmatprep.mubr.f32.mxu0 %v831_v0 }
  0x2a   : > { %754 = vmatmul.mubr.msk.f32.gmra.mrb[10].mxu0 %vm260_vm1, %v255_v23 }
  0x2b   : > { %390 = vmatprep.mubr.f32.mxu0 %v831_v0 }
  0x2e   : > { %755 = vmatmul.mubr.msk.f32.gmra.mrb[12].mxu0 %vm260_vm1, %v256_v26 }
  0x2f   : > { %396 = vmatprep.mubr.f32.mxu0 %v831_v0 }
  0x32   : > { %756 = vmatmul.mubr.msk.f32.gmra.mrb[14].mxu0 %vm260_vm1, %v257_v27 }
  0x88   : > { %v414_v28 = vpop.permute.xlu0 %413  ;;  %v478_v29 = vpop.permute.xlu1 %477 }
  0x8c   : > { %v419_v30 = vpop.permute.xlu0 %418  ;;  %v483_v31 = vpop.permute.xlu1 %482 }
  0x90   : > { %v424_v32 = vpop.permute.xlu0 %423  ;;  %v429_v33 = vpop.permute.xlu1 %428 }
  0x94   : > { %v493_v43 = vpop.permute.xlu1 %492 }
  0x95   : > { %v488_v38 = vpop.permute.xlu0 %487 }
  0x98   : > { %v439_v58 = vpop.permute.xlu1 %438 }
  0x99   : > { %v434_v53 = vpop.permute.xlu0 %433 }
  0x9c   : > { %v503_v11 = vpop.permute.xlu1 %502 }
  0x9d   : > { %v498_v4 = vpop.permute.xlu0 %497 }
  0xa0   : > { %v449_v25 = vpop.permute.xlu1 %448 }
  0xa1   : > { %v444_v21 = vpop.permute.xlu0 %443 }
  0xe9   : > { %v356_v34 = vpop.f32.mrb[0].mxu0 }
  0xea   : > { %v451_v35 = vmul.f32 %v414_v28, %v356_v34  ;;  %v358_v36 = vpop.f32.mrb[1].mxu0 }
  0xeb   : > { %v452_v37 = vmul.f32 %v414_v28, %v358_v36  ;;  %v508_v36 = vpop.permute.xlu0 %507 }
  0xec   : > { %v515_v40 = vadd.f32 %v478_v29, %v451_v35 }
  0xed   : > { %v362_v39 = vpop.f32.mrb[2].mxu0  ;;  %v516_v45 = vadd.f32 %v478_v29, %v452_v37 }
  0xee   : > { %v453_v41 = vmul.f32 %v419_v30, %v362_v39  ;;  %v364_v42 = vpop.f32.mrb[3].mxu0  ;;  %v531_v49 = vmax.f32 %v515_v40, 0.0 }
  0xef   : > { %v454_v44 = vmul.f32 %v419_v30, %v364_v42  ;;  %v532_v55 = vmax.f32 %v516_v45, 0.0  ;;  %v513_v42 = vpop.permute.xlu1 %512 }
  0xf0   : > { %v517_v46 = vadd.f32 %v483_v31, %v453_v41 }
  0xf1   : > { %v368_v47 = vpop.f32.mrb[4].mxu0  ;;  %v518_v48 = vadd.f32 %v483_v31, %v454_v44 }
  0xf2   : > { %v533_v50 = vmax.f32 %v517_v46, 0.0  ;;  %v455_v51 = vmul.f32 %v424_v32, %v368_v47  ;;  %v370_v52 = vpop.f32.mrb[5].mxu0 }
  0xf3   : > { %v456_v54 = vmul.f32 %v424_v32, %v370_v52  ;;  %v534_v56 = vmax.f32 %v518_v48, 0.0 }
  0xf4   : > { %v763_v57 = vpack.c.bf16 %v533_v50, %v531_v49  ;;  %v519_v61 = vadd.f32 %v488_v38, %v455_v51 }
  0xf5   : > { %v374_v59 = vpop.f32.mrb[6].mxu0  ;;  %v761_v60 = vpack.c.bf16 %v534_v56, %v532_v55  ;;  %v520_v1 = vadd.f32 %v488_v38, %v456_v54  ;;  %v627_v54 = vlaneseq  ;;  %v833_v55 = vmov 1966171168  }
  0xf6   : > { %v457_v62 = vmul.f32 %v429_v33, %v374_v59  ;;  %v376_v63 = vpop.f32.mrb[7].mxu0  ;;  %v535_v7 = vmax.f32 %v519_v61, 0.0  ;;  %v637_v56 = vunpack.c.l.s4 %v833_v55 }
  0xf7   : > { %v458_v2 = vmul.f32 %v429_v33, %v376_v63  ;;  %762 = vmatprep.subr.bf16.mxu1 %v761_v60  ;;  %v536_v12 = vmax.f32 %v520_v1, 0.0  ;;  %vm629_vm3 = vcmp.lt.s32.totalorder %v627_v54, 256 }
  0xf8   : > { %v521_v3 = vadd.f32 %v493_v43, %v457_v62  ;;  %764 = vmatpush1.bf16.msra.mxu1 %v763_v57  ;;  %631 = vst.msk [vmem:[#allocation2] sm:$0x3] %vm629_vm3, %v831_v0  ;;  %v638_v57 = vunpack.c.0.s8 %v637_v56 }
  0xf9   : > { %v522_v5 = vadd.f32 %v493_v43, %v458_v2  ;;  %v380_v6 = vpop.f32.mrb[8].mxu0 }
  0xfa   : > { %v537_v8 = vmax.f32 %v521_v3, 0.0  ;;  %v459_v9 = vmul.f32 %v434_v53, %v380_v6  ;;  %v382_v10 = vpop.f32.mrb[9].mxu0 }
  0xfb   : > { %v538_v13 = vmax.f32 %v522_v5, 0.0  ;;  %v460_v14 = vmul.f32 %v434_v53, %v382_v10  ;;  %v547_v53 = vld [vmem:[%s998_s4] sm:$0x1] }
  0xfc   : > { %v767_v15 = vpack.c.bf16 %v537_v8, %v535_v7  ;;  %v523_v18 = vadd.f32 %v498_v4, %v459_v9 }
  0xfd   : > { %v386_v16 = vpop.f32.mrb[10].mxu0  ;;  %v765_v17 = vpack.c.bf16 %v538_v13, %v536_v12  ;;  %v524_v22 = vadd.f32 %v498_v4, %v460_v14 }
  0xfe   : > { %v461_v19 = vmul.f32 %v439_v58, %v386_v16  ;;  %v388_v20 = vpop.f32.mrb[11].mxu0  ;;  %v539_v28 = vmax.f32 %v523_v18, 0.0 }
  0xff   : > { %v462_v23 = vmul.f32 %v439_v58, %v388_v20  ;;  %766 = vmatprep.subr.bf16.mxu1 %v765_v17  ;;  %v540_v32 = vmax.f32 %v524_v22, 0.0  ;;  %v640_v58 = vshrl.u32 %v627_v54, 7  ;;  %v632_v1 = vld [vmem:[#allocation2] sm:$0x3] }
 0x100   : > { %v525_v24 = vadd.f32 %v503_v11, %v461_v19  ;;  %768 = vmatpush1.bf16.msra.mxu1 %v767_v15 }
 0x101   : > { %v526_v26 = vadd.f32 %v503_v11, %v462_v23  ;;  %v392_v27 = vpop.f32.mrb[12].mxu0  ;;  %v641_v60 = vsub.s32 %v638_v57, %v640_v58  ;;  %v664_v4 = vsub.s32 0, %v640_v58  ;;  %v668_v5 = vsub.s32 1, %v640_v58 }
 0x102   : > { %v541_v29 = vmax.f32 %v525_v24, 0.0  ;;  %v463_v30 = vmul.f32 %v444_v21, %v392_v27  ;;  %v394_v31 = vpop.f32.mrb[13].mxu0 }
 0x103   : > { %v542_v33 = vmax.f32 %v526_v26, 0.0  ;;  %v464_v34 = vmul.f32 %v444_v21, %v394_v31 }
 0x104   : > { %v771_v35 = vpack.c.bf16 %v541_v29, %v539_v28  ;;  %v527_v39 = vadd.f32 %v508_v36, %v463_v30 }
 0x105   : > { %v398_v37 = vpop.f32.mrb[14].mxu0  ;;  %v769_v38 = vpack.c.bf16 %v542_v33, %v540_v32  ;;  %v528_v43 = vadd.f32 %v508_v36, %v464_v34 }
 0x106   : > { %v465_v40 = vmul.f32 %v449_v25, %v398_v37  ;;  %v400_v41 = vpop.f32.mrb[15].mxu0  ;;  %v543_v47 = vmax.f32 %v527_v39, 0.0 }
 0x107   : > { %v466_v44 = vmul.f32 %v449_v25, %v400_v41  ;;  %770 = vmatprep.subr.bf16.mxu1 %v769_v38  ;;  %v544_v49 = vmax.f32 %v528_v43, 0.0 }
 0x108   : > { %v529_v45 = vadd.f32 %v513_v42, %v465_v40  ;;  %772 = vmatpush1.bf16.msra.mxu1 %v771_v35 }
 0x109   : > { %v530_v46 = vadd.f32 %v513_v42, %v466_v44 }
 0x10a   : > { %v545_v48 = vmax.f32 %v529_v45, 0.0 }
 0x10b   : > { %v546_v50 = vmax.f32 %v530_v46, 0.0 }
 0x10c   : > { %v775_v51 = vpack.c.bf16 %v545_v48, %v543_v47 }
 0x10d   : > { %v773_v52 = vpack.c.bf16 %v546_v50, %v544_v49 }
 0x10f   : > { %774 = vmatprep.subr.bf16.mxu1 %v773_v52 }
 0x110   : > { %776 = vmatpush1.bf16.msra.mxu1 %v775_v51 }
 0x113   : > { %757 = vmatmul.mubr.msk.f32.vlgmr.msra.gmra.mrb[0].mxu1 %vm548_vm2, %v547_v53 }
 0x1e6   : > { %v618_v59 = vpop.f32.mrb[0].mxu1 }
 0x1e7   : > { %v620_v61 = vpop.f32.mrb[1].mxu1 }
 0x1e8   : > { %v635_v62 = vcombine.low %v618_v59, %v620_v61 }
 0x1ea   : > { %v642_v63 = vrot.slane %v635_v62, %v641_v60 }
 0x1ec   : > { %v649_v2 = vrot.slane %v642_v63, %v641_v60 }
 0x1ee   : > { %v651_v3 = vadd.f32 %v649_v2, %v632_v1 }
 0x1f0   : > { %656 = vst.msk [vmem:[#allocation2] sm:$0x3] %vm629_vm3, %v651_v3 }
 0x1f7   : > { %v660_v6 = vld [vmem:[#allocation2] sm:$0x3] }
 0x1f8   : > { %v665_v7 = vrot.slane %v660_v6, %v664_v4  ;;  %v669_v0 = vrot.slane %v660_v6, %v668_v5 }
 0x1fa   : > { %v673_v8 = vsel %vm672_vm4, %v665_v7, 0.0  ;;  %v674_v9 = vsel %vm672_vm4, %v669_v0, 0.0 }
 0x1fb   : > { %v675_v10 = vadd.f32 %v674_v9, %v673_v8 }
 0x1fd   : > { %676 = vadd.xlane.f32.xlu0 %v675_v10 }
 0x28a   : > { %v677_v11 = vpop.xlane.xlu0 %676 }
 0x28b   : > { %678 = vst [vmem:[%s248_s11] sm:$0x1] %v677_v11 }
 0x28c PF: > { %s15_s20 = sadd.s32 1, %s829_s20   ;;  %s1000_s18 = smov %s825_s19 }
 0x28d   : > { %p12_p5 = scmp.ge.s32.totalorder %s15_s20, 4   ;;  %s1001_s19 = smov %s1003_s21 }
 0x28f   :  { %14 = sbr.rel (!%p12_p5) target bundleno = 2 (0x2), region = 78 }

</bundles_post_ra>
